<compile_context>
chip_gen: v5e
topology: v5e:2x2
jax: 0.10.0
libtpu: 0.0.40
codegen_flags: <defaults>
</compile_context>

<pallas_src>
import functools
import math

import jax
import jax.numpy as jnp
from jax import lax
from jax.experimental import pallas as pl
from jax.experimental.pallas import tpu as pltpu


# ----------------------------------------------------------------------------
# Fused multi-head attention kernel (one grid step = one batch element).
# ----------------------------------------------------------------------------
def _mha_kernel(x_ref, wq_ref, wk_ref, wv_ref, bq_ref, bk_ref, bv_ref,
                wo_ref, bo_ref, o_ref, *rest, num_heads, scale, emit_weights):
    if emit_weights:
        w_ref, acc_ref = rest
    else:
        (acc_ref,) = rest

    x = x_ref[0]                                      # (S, H)
    acc_ref[...] = jnp.zeros_like(acc_ref)            # (S, H) f32 accumulator

    for h in range(num_heads):                        # static unroll over heads
        # Per-head projections: (S, H) @ (H, dh) on the MXU, f32 accumulation.
        q = jnp.dot(x, wq_ref[h], preferred_element_type=jnp.float32) + bq_ref[h]
        k = jnp.dot(x, wk_ref[h], preferred_element_type=jnp.float32) + bk_ref[h]
        v = jnp.dot(x, wv_ref[h], preferred_element_type=jnp.float32) + bv_ref[h]

        # Scaled scores + numerically-stable softmax.
        s = jnp.dot(q, k.T, preferred_element_type=jnp.float32) * scale   # (S, S)
        s = s - jnp.max(s, axis=-1, keepdims=True)
        e = jnp.exp(s)                                                    # EUP
        p = e * pl.reciprocal(jnp.sum(e, axis=-1, keepdims=True))         # exact

        if emit_weights:
            w_ref[0, h] = p                                               # (S, S)

        # context_h = probs_h @ v_h, then fold the output projection slab in:
        # acc += (probs_h @ v_h) @ Wo_h   -- cheaper ordering since dh < H.
        ctx = jnp.dot(p, v, preferred_element_type=jnp.float32)           # (S, dh)
        acc_ref[...] += jnp.dot(ctx, wo_ref[h],
                                preferred_element_type=jnp.float32)       # (S, H)

    o_ref[0] = (acc_ref[...] + bo_ref[...]).astype(o_ref.dtype)


def attention_forward(params, hidden_states, *, num_heads, vis=False):
    """hidden_states: (B, S, H). Returns (output (B,S,H), weights or None)."""
    B, S, H = hidden_states.shape
    assert H % num_heads == 0
    dh = H // num_heads
    scale = 1.0 / math.sqrt(dh)
    f32 = jnp.float32

    # Torch Linear stores weight as (out_features, in_features): y = x @ W.T + b.
    # Pre-reshape into per-head slabs so the kernel never reshapes/slices lanes.
    def per_head_in(w):                       # (H, H) torch -> (heads, H, dh)
        return jnp.transpose(w.T.reshape(H, num_heads, dh), (1, 0, 2)).astype(f32)

    wq = per_head_in(params["wq"])
    wk = per_head_in(params["wk"])
    wv = per_head_in(params["wv"])
    bq = params["bq"].reshape(num_heads, 1, dh).astype(f32)
    bk = params["bk"].reshape(num_heads, 1, dh).astype(f32)
    bv = params["bv"].reshape(num_heads, 1, dh).astype(f32)
    # Wo.T contracts the concatenated-head axis: (heads*dh, H) -> (heads, dh, H).
    wo = params["wo"].T.reshape(num_heads, dh, H).astype(f32)
    bo = params["bo"].reshape(1, H).astype(f32)
    x = hidden_states.astype(f32)

    kernel = functools.partial(_mha_kernel, num_heads=num_heads, scale=scale,
                               emit_weights=vis)

    in_specs = [
        pl.BlockSpec((1, S, H), lambda b: (b, 0, 0)),               # x
        pl.BlockSpec((num_heads, H, dh), lambda b: (0, 0, 0)),      # wq
        pl.BlockSpec((num_heads, H, dh), lambda b: (0, 0, 0)),      # wk
        pl.BlockSpec((num_heads, H, dh), lambda b: (0, 0, 0)),      # wv
        pl.BlockSpec((num_heads, 1, dh), lambda b: (0, 0, 0)),      # bq
        pl.BlockSpec((num_heads, 1, dh), lambda b: (0, 0, 0)),      # bk
        pl.BlockSpec((num_heads, 1, dh), lambda b: (0, 0, 0)),      # bv
        pl.BlockSpec((num_heads, dh, H), lambda b: (0, 0, 0)),      # wo
        pl.BlockSpec((1, H), lambda b: (0, 0)),                     # bo
    ]

    out_spec_o = pl.BlockSpec((1, S, H), lambda b: (b, 0, 0))
    if vis:
        out_shape = (jax.ShapeDtypeStruct((B, S, H), f32),
                     jax.ShapeDtypeStruct((B, num_heads, S, S), f32))
        out_specs = (out_spec_o,
                     pl.BlockSpec((1, num_heads, S, S), lambda b: (b, 0, 0, 0)))
    else:
        out_shape = jax.ShapeDtypeStruct((B, S, H), f32)
        out_specs = out_spec_o

    grid_spec = pltpu.PrefetchScalarGridSpec(
        num_scalar_prefetch=0,
        grid=(B,),
        in_specs=in_specs,
        out_specs=out_specs,
        scratch_shapes=[pltpu.VMEM((S, H), jnp.float32)],
    )

    result = pl.pallas_call(
        kernel,
        out_shape=out_shape,
        grid_spec=grid_spec,
        compiler_params=pltpu.CompilerParams(dimension_semantics=("parallel",)),
    )(x, wq, wk, wv, bq, bk, bv, wo, bo)

    if vis:
        out, weights = result
        return out, weights
    return result, None


# ----------------------------------------------------------------------------
# Deterministic parameter init (torch Linear layout: weight (out, in), bias (out,)).
# ----------------------------------------------------------------------------
def init_attention_params(key, hidden_size):
    ks = jax.random.split(key, 8)

    def lin(kw, kb, out_f, in_f):
        bound = 1.0 / math.sqrt(in_f)
        w = jax.random.uniform(kw, (out_f, in_f), jnp.float32, -bound, bound)
        b = jax.random.uniform(kb, (out_f,), jnp.float32, -bound, bound)
        return w, b

    wq, bq = lin(ks[0], ks[1], hidden_size, hidden_size)
    wk, bk = lin(ks[2], ks[3], hidden_size, hidden_size)
    wv, bv = lin(ks[4], ks[5], hidden_size, hidden_size)
    wo, bo = lin(ks[6], ks[7], hidden_size, hidden_size)
    return dict(wq=wq, bq=bq, wk=wk, bk=bk, wv=wv, bv=bv, wo=wo, bo=bo)


# ----------------------------------------------------------------------------
# Pure-JAX reference (same math, torch layout) for a sanity check.
# ----------------------------------------------------------------------------
def reference_attention(params, x, *, num_heads):
    B, S, H = x.shape
    dh = H // num_heads
    hp = lax.Precision.HIGHEST

    def linear(v, w, b):
        return jnp.einsum("bsh,oh->bso", v, w, precision=hp) + b

    def heads(t):
        return t.reshape(B, S, num_heads, dh).transpose(0, 2, 1, 3)

    q = heads(linear(x, params["wq"], params["bq"]))
    k = heads(linear(x, params["wk"], params["bk"]))
    v = heads(linear(x, params["wv"], params["bv"]))

    scores = jnp.einsum("bhsd,bhtd->bhst", q, k, precision=hp) / math.sqrt(dh)
    probs = jax.nn.softmax(scores, axis=-1)
    ctx = jnp.einsum("bhst,bhtd->bhsd", probs, v, precision=hp)
    ctx = ctx.transpose(0, 2, 1, 3).reshape(B, S, H)
    out = linear(ctx, params["wo"], params["bo"])
    return out, probs


if __name__ == "__main__":
    key = jax.random.PRNGKey(0)
    k_x, k_p = jax.random.split(key, 2)

    B, S, H, NUM_HEADS = 2, 8, 32, 4          # head_dim = 8
    x = jax.random.normal(k_x, (B, S, H), jnp.float32)
    params = init_attention_params(k_p, H)

    # vis=True path (output + attention weights).
    out, weights = attention_forward(params, x, num_heads=NUM_HEADS, vis=True)
    out = jax.block_until_ready(out)
    weights = jax.block_until_ready(weights)
    assert out.shape == (B, S, H), out.shape
    assert weights.shape == (B, NUM_HEADS, S, S), weights.shape

    ref_out, ref_w = reference_attention(params, x, num_heads=NUM_HEADS)
    ref_out = jax.block_until_ready(ref_out)

    err_out = float(jnp.max(jnp.abs(out - ref_out)))
    err_w = float(jnp.max(jnp.abs(weights - ref_w)))
    assert err_out < 1e-2, f"output max abs error {err_out}"
    assert err_w < 1e-2, f"weights max abs error {err_w}"

    # vis=False path (weights not materialized).
    out2, w2 = attention_forward(params, x, num_heads=NUM_HEADS, vis=False)
    out2 = jax.block_until_ready(out2)
    assert w2 is None
    err_out2 = float(jnp.max(jnp.abs(out2 - ref_out)))
    assert err_out2 < 1e-2, f"output (vis=False) max abs error {err_out2}"

    print("KERNEL_OK")
</pallas_src>

<mosaic_0001>
module attributes {stable_mosaic.version = 11 : i64} {
  func.func @_mha_kernel(%arg0: i32, %arg1: memref<1x8x32xf32, #tpu.memory_space<vmem>>, %arg2: memref<4x32x8xf32, #tpu.memory_space<vmem>>, %arg3: memref<4x32x8xf32, #tpu.memory_space<vmem>>, %arg4: memref<4x32x8xf32, #tpu.memory_space<vmem>>, %arg5: memref<4x1x8xf32, #tpu.memory_space<vmem>>, %arg6: memref<4x1x8xf32, #tpu.memory_space<vmem>>, %arg7: memref<4x1x8xf32, #tpu.memory_space<vmem>>, %arg8: memref<4x8x32xf32, #tpu.memory_space<vmem>>, %arg9: memref<1x32xf32, #tpu.memory_space<vmem>>, %arg10: memref<1x8x32xf32, #tpu.memory_space<vmem>>, %arg11: memref<1x4x8x8xf32, #tpu.memory_space<vmem>>, %arg12: memref<8x32xf32, #tpu.memory_space<vmem>>) attributes {dimension_semantics = [#tpu.dimension_semantics<parallel>], iteration_bounds = array<i64: 2>, scalar_prefetch = 0 : i64, scratch_operands = 1 : i64, tpu.core_type = #tpu.core_type<tc>, window_params = [{transform_indices = @transform_0, window_bounds = array<i64: 1, 8, 32>}, {pipeline_mode = #tpu.pipeline_mode<synchronous>, transform_indices = @transform_1, window_bounds = array<i64: 4, 32, 8>}, {pipeline_mode = #tpu.pipeline_mode<synchronous>, transform_indices = @transform_2, window_bounds = array<i64: 4, 32, 8>}, {pipeline_mode = #tpu.pipeline_mode<synchronous>, transform_indices = @transform_3, window_bounds = array<i64: 4, 32, 8>}, {pipeline_mode = #tpu.pipeline_mode<synchronous>, transform_indices = @transform_4, window_bounds = array<i64: 4, 1, 8>}, {pipeline_mode = #tpu.pipeline_mode<synchronous>, transform_indices = @transform_5, window_bounds = array<i64: 4, 1, 8>}, {pipeline_mode = #tpu.pipeline_mode<synchronous>, transform_indices = @transform_6, window_bounds = array<i64: 4, 1, 8>}, {pipeline_mode = #tpu.pipeline_mode<synchronous>, transform_indices = @transform_7, window_bounds = array<i64: 4, 8, 32>}, {pipeline_mode = #tpu.pipeline_mode<synchronous>, transform_indices = @transform_8, window_bounds = array<i64: 1, 32>}, {transform_indices = @transform_9, window_bounds = array<i64: 1, 8, 32>}, {transform_indices = @transform_10, window_bounds = array<i64: 1, 4, 8, 8>}]} {
    %c0 = arith.constant 0 : index
    %c0_0 = arith.constant 0 : index
    %c0_1 = arith.constant 0 : index
    %0 = vector.load %arg1[%c0, %c0_0, %c0_1] : memref<1x8x32xf32, #tpu.memory_space<vmem>>, vector<1x8x32xf32>
    %1 = vector.shape_cast %0 : vector<1x8x32xf32> to vector<8x32xf32>
    %cst = arith.constant 0.000000e+00 : f32
    %2 = vector.broadcast %cst : f32 to vector<8x32xf32>
    %c0_2 = arith.constant 0 : index
    %c0_3 = arith.constant 0 : index
    %3 = vector.load %arg12[%c0_2, %c0_3] : memref<8x32xf32, #tpu.memory_space<vmem>>, vector<8x32xf32>
    tpu.vector_store %arg12[%c0_2, %c0_3], %2 {strides = array<i32>} : memref<8x32xf32, #tpu.memory_space<vmem>>, vector<8x32xf32>,
    %c0_4 = arith.constant 0 : index
    %c0_5 = arith.constant 0 : index
    %c0_6 = arith.constant 0 : index
    %4 = vector.load %arg2[%c0_4, %c0_5, %c0_6] : memref<4x32x8xf32, #tpu.memory_space<vmem>>, vector<1x32x8xf32>
    %5 = vector.shape_cast %4 : vector<1x32x8xf32> to vector<32x8xf32>
    %cst_7 = arith.constant dense<0.000000e+00> : vector<8x8xf32>
    %6 = tpu.matmul %1, %5, %cst_7 {dimension_numbers = #tpu.dot_dimension_numbers<[1], [0], [0], [1], [0, 0, 1, 1], [], []>} : vector<8x32xf32>, vector<32x8xf32>, vector<8x8xf32> -> vector<8x8xf32>
    %c0_8 = arith.constant 0 : index
    %c0_9 = arith.constant 0 : index
    %c0_10 = arith.constant 0 : index
    %7 = vector.load %arg5[%c0_8, %c0_9, %c0_10] : memref<4x1x8xf32, #tpu.memory_space<vmem>>, vector<1x1x8xf32>
    %8 = vector.shape_cast %7 : vector<1x1x8xf32> to vector<1x8xf32>
    %9 = vector.broadcast %8 : vector<1x8xf32> to vector<8x8xf32>
    %10 = arith.addf %6, %9 : vector<8x8xf32>
    %c0_11 = arith.constant 0 : index
    %c0_12 = arith.constant 0 : index
    %c0_13 = arith.constant 0 : index
    %11 = vector.load %arg3[%c0_11, %c0_12, %c0_13] : memref<4x32x8xf32, #tpu.memory_space<vmem>>, vector<1x32x8xf32>
    %12 = vector.shape_cast %11 : vector<1x32x8xf32> to vector<32x8xf32>
    %cst_14 = arith.constant dense<0.000000e+00> : vector<8x8xf32>
    %13 = tpu.matmul %1, %12, %cst_14 {dimension_numbers = #tpu.dot_dimension_numbers<[1], [0], [0], [1], [0, 0, 1, 1], [], []>} : vector<8x32xf32>, vector<32x8xf32>, vector<8x8xf32> -> vector<8x8xf32>
    %c0_15 = arith.constant 0 : index
    %c0_16 = arith.constant 0 : index
    %c0_17 = arith.constant 0 : index
    %14 = vector.load %arg6[%c0_15, %c0_16, %c0_17] : memref<4x1x8xf32, #tpu.memory_space<vmem>>, vector<1x1x8xf32>
    %15 = vector.shape_cast %14 : vector<1x1x8xf32> to vector<1x8xf32>
    %16 = vector.broadcast %15 : vector<1x8xf32> to vector<8x8xf32>
    %17 = arith.addf %13, %16 : vector<8x8xf32>
    %c0_18 = arith.constant 0 : index
    %c0_19 = arith.constant 0 : index
    %c0_20 = arith.constant 0 : index
    %18 = vector.load %arg4[%c0_18, %c0_19, %c0_20] : memref<4x32x8xf32, #tpu.memory_space<vmem>>, vector<1x32x8xf32>
    %19 = vector.shape_cast %18 : vector<1x32x8xf32> to vector<32x8xf32>
    %cst_21 = arith.constant dense<0.000000e+00> : vector<8x8xf32>
    %20 = tpu.matmul %1, %19, %cst_21 {dimension_numbers = #tpu.dot_dimension_numbers<[1], [0], [0], [1], [0, 0, 1, 1], [], []>} : vector<8x32xf32>, vector<32x8xf32>, vector<8x8xf32> -> vector<8x8xf32>
    %c0_22 = arith.constant 0 : index
    %c0_23 = arith.constant 0 : index
    %c0_24 = arith.constant 0 : index
    %21 = vector.load %arg7[%c0_22, %c0_23, %c0_24] : memref<4x1x8xf32, #tpu.memory_space<vmem>>, vector<1x1x8xf32>
    %22 = vector.shape_cast %21 : vector<1x1x8xf32> to vector<1x8xf32>
    %23 = vector.broadcast %22 : vector<1x8xf32> to vector<8x8xf32>
    %24 = arith.addf %20, %23 : vector<8x8xf32>
    %25 = tpu.transpose %17, [1, 0] : vector<8x8xf32> -> vector<8x8xf32>
    %cst_25 = arith.constant dense<0.000000e+00> : vector<8x8xf32>
    %26 = tpu.matmul %10, %25, %cst_25 {dimension_numbers = #tpu.dot_dimension_numbers<[1], [0], [0], [1], [0, 0, 1, 1], [], []>} : vector<8x8xf32>, vector<8x8xf32>, vector<8x8xf32> -> vector<8x8xf32>
    %cst_26 = arith.constant 0.353553385 : f32
    %27 = vector.broadcast %cst_26 : f32 to vector<8x8xf32>
    %28 = arith.mulf %26, %27 : vector<8x8xf32>
    %cst_27 = arith.constant dense<0xFF800000> : vector<8xf32>
    %29 = vector.multi_reduction <maximumf>, %28, %cst_27 [1] : vector<8x8xf32> to vector<8xf32>
    %30 = vector.shape_cast %29 : vector<8xf32> to vector<8x1xf32>
    %31 = vector.broadcast %30 : vector<8x1xf32> to vector<8x8xf32>
    %32 = arith.subf %28, %31 : vector<8x8xf32>
    %33 = math.exp %32 : vector<8x8xf32>
    %cst_28 = arith.constant dense<0.000000e+00> : vector<8xf32>
    %34 = vector.multi_reduction <add>, %33, %cst_28 [1] : vector<8x8xf32> to vector<8xf32>
    %35 = vector.shape_cast %34 : vector<8xf32> to vector<8x1xf32>
    %36 = tpu.reciprocal %35 : vector<8x1xf32> -> vector<8x1xf32>
    %37 = vector.broadcast %36 : vector<8x1xf32> to vector<8x8xf32>
    %38 = arith.mulf %33, %37 : vector<8x8xf32>
    %c0_29 = arith.constant 0 : index
    %c0_30 = arith.constant 0 : index
    %c0_31 = arith.constant 0 : index
    %c0_32 = arith.constant 0 : index
    %39 = vector.load %arg11[%c0_29, %c0_30, %c0_31, %c0_32] : memref<1x4x8x8xf32, #tpu.memory_space<vmem>>, vector<1x1x8x8xf32>
    %40 = vector.shape_cast %39 : vector<1x1x8x8xf32> to vector<8x8xf32>
    %41 = vector.shape_cast %38 : vector<8x8xf32> to vector<1x1x8x8xf32>
    tpu.vector_store %arg11[%c0_29, %c0_30, %c0_31, %c0_32], %41 {strides = array<i32>} : memref<1x4x8x8xf32, #tpu.memory_space<vmem>>, vector<1x1x8x8xf32>,
    %cst_33 = arith.constant dense<0.000000e+00> : vector<8x8xf32>
    %42 = tpu.matmul %38, %24, %cst_33 {dimension_numbers = #tpu.dot_dimension_numbers<[1], [0], [0], [1], [0, 0, 1, 1], [], []>} : vector<8x8xf32>, vector<8x8xf32>, vector<8x8xf32> -> vector<8x8xf32>
    %c0_34 = arith.constant 0 : index
    %c0_35 = arith.constant 0 : index
    %43 = vector.load %arg12[%c0_34, %c0_35] : memref<8x32xf32, #tpu.memory_space<vmem>>, vector<8x32xf32>
    %c0_36 = arith.constant 0 : index
    %c0_37 = arith.constant 0 : index
    %c0_38 = arith.constant 0 : index
    %44 = vector.load %arg8[%c0_36, %c0_37, %c0_38] : memref<4x8x32xf32, #tpu.memory_space<vmem>>, vector<1x8x32xf32>
    %45 = vector.shape_cast %44 : vector<1x8x32xf32> to vector<8x32xf32>
    %cst_39 = arith.constant dense<0.000000e+00> : vector<8x32xf32>
    %46 = tpu.matmul %42, %45, %cst_39 {dimension_numbers = #tpu.dot_dimension_numbers<[1], [0], [0], [1], [0, 0, 1, 1], [], []>} : vector<8x8xf32>, vector<8x32xf32>, vector<8x32xf32> -> vector<8x32xf32>
    %47 = arith.addf %43, %46 : vector<8x32xf32>
    %c0_40 = arith.constant 0 : index
    %c0_41 = arith.constant 0 : index
    %48 = vector.load %arg12[%c0_40, %c0_41] : memref<8x32xf32, #tpu.memory_space<vmem>>, vector<8x32xf32>
    tpu.vector_store %arg12[%c0_40, %c0_41], %47 {strides = array<i32>} : memref<8x32xf32, #tpu.memory_space<vmem>>, vector<8x32xf32>,
    %c1 = arith.constant 1 : index
    %c0_42 = arith.constant 0 : index
    %c0_43 = arith.constant 0 : index
    %49 = vector.load %arg2[%c1, %c0_42, %c0_43] : memref<4x32x8xf32, #tpu.memory_space<vmem>>, vector<1x32x8xf32>
    %50 = vector.shape_cast %49 : vector<1x32x8xf32> to vector<32x8xf32>
    %cst_44 = arith.constant dense<0.000000e+00> : vector<8x8xf32>
    %51 = tpu.matmul %1, %50, %cst_44 {dimension_numbers = #tpu.dot_dimension_numbers<[1], [0], [0], [1], [0, 0, 1, 1], [], []>} : vector<8x32xf32>, vector<32x8xf32>, vector<8x8xf32> -> vector<8x8xf32>
    %c1_45 = arith.constant 1 : index
    %c0_46 = arith.constant 0 : index
    %c0_47 = arith.constant 0 : index
    %52 = vector.load %arg5[%c1_45, %c0_46, %c0_47] : memref<4x1x8xf32, #tpu.memory_space<vmem>>, vector<1x1x8xf32>
    %53 = vector.shape_cast %52 : vector<1x1x8xf32> to vector<1x8xf32>
    %54 = vector.broadcast %53 : vector<1x8xf32> to vector<8x8xf32>
    %55 = arith.addf %51, %54 : vector<8x8xf32>
    %c1_48 = arith.constant 1 : index
    %c0_49 = arith.constant 0 : index
    %c0_50 = arith.constant 0 : index
    %56 = vector.load %arg3[%c1_48, %c0_49, %c0_50] : memref<4x32x8xf32, #tpu.memory_space<vmem>>, vector<1x32x8xf32>
    %57 = vector.shape_cast %56 : vector<1x32x8xf32> to vector<32x8xf32>
    %cst_51 = arith.constant dense<0.000000e+00> : vector<8x8xf32>
    %58 = tpu.matmul %1, %57, %cst_51 {dimension_numbers = #tpu.dot_dimension_numbers<[1], [0], [0], [1], [0, 0, 1, 1], [], []>} : vector<8x32xf32>, vector<32x8xf32>, vector<8x8xf32> -> vector<8x8xf32>
    %c1_52 = arith.constant 1 : index
    %c0_53 = arith.constant 0 : index
    %c0_54 = arith.constant 0 : index
    %59 = vector.load %arg6[%c1_52, %c0_53, %c0_54] : memref<4x1x8xf32, #tpu.memory_space<vmem>>, vector<1x1x8xf32>
    %60 = vector.shape_cast %59 : vector<1x1x8xf32> to vector<1x8xf32>
    %61 = vector.broadcast %60 : vector<1x8xf32> to vector<8x8xf32>
    %62 = arith.addf %58, %61 : vector<8x8xf32>
    %c1_55 = arith.constant 1 : index
    %c0_56 = arith.constant 0 : index
    %c0_57 = arith.constant 0 : index
    %63 = vector.load %arg4[%c1_55, %c0_56, %c0_57] : memref<4x32x8xf32, #tpu.memory_space<vmem>>, vector<1x32x8xf32>
    %64 = vector.shape_cast %63 : vector<1x32x8xf32> to vector<32x8xf32>
    %cst_58 = arith.constant dense<0.000000e+00> : vector<8x8xf32>
    %65 = tpu.matmul %1, %64, %cst_58 {dimension_numbers = #tpu.dot_dimension_numbers<[1], [0], [0], [1], [0, 0, 1, 1], [], []>} : vector<8x32xf32>, vector<32x8xf32>, vector<8x8xf32> -> vector<8x8xf32>
    %c1_59 = arith.constant 1 : index
    %c0_60 = arith.constant 0 : index
    %c0_61 = arith.constant 0 : index
    %66 = vector.load %arg7[%c1_59, %c0_60, %c0_61] : memref<4x1x8xf32, #tpu.memory_space<vmem>>, vector<1x1x8xf32>
    %67 = vector.shape_cast %66 : vector<1x1x8xf32> to vector<1x8xf32>
    %68 = vector.broadcast %67 : vector<1x8xf32> to vector<8x8xf32>
    %69 = arith.addf %65, %68 : vector<8x8xf32>
    %70 = tpu.transpose %62, [1, 0] : vector<8x8xf32> -> vector<8x8xf32>
    %cst_62 = arith.constant dense<0.000000e+00> : vector<8x8xf32>
    %71 = tpu.matmul %55, %70, %cst_62 {dimension_numbers = #tpu.dot_dimension_numbers<[1], [0], [0], [1], [0, 0, 1, 1], [], []>} : vector<8x8xf32>, vector<8x8xf32>, vector<8x8xf32> -> vector<8x8xf32>
    %cst_63 = arith.constant 0.353553385 : f32
    %72 = vector.broadcast %cst_63 : f32 to vector<8x8xf32>
    %73 = arith.mulf %71, %72 : vector<8x8xf32>
    %cst_64 = arith.constant dense<0xFF800000> : vector<8xf32>
    %74 = vector.multi_reduction <maximumf>, %73, %cst_64 [1] : vector<8x8xf32> to vector<8xf32>
    %75 = vector.shape_cast %74 : vector<8xf32> to vector<8x1xf32>
    %76 = vector.broadcast %75 : vector<8x1xf32> to vector<8x8xf32>
    %77 = arith.subf %73, %76 : vector<8x8xf32>
    %78 = math.exp %77 : vector<8x8xf32>
    %cst_65 = arith.constant dense<0.000000e+00> : vector<8xf32>
    %79 = vector.multi_reduction <add>, %78, %cst_65 [1] : vector<8x8xf32> to vector<8xf32>
    %80 = vector.shape_cast %79 : vector<8xf32> to vector<8x1xf32>
    %81 = tpu.reciprocal %80 : vector<8x1xf32> -> vector<8x1xf32>
    %82 = vector.broadcast %81 : vector<8x1xf32> to vector<8x8xf32>
    %83 = arith.mulf %78, %82 : vector<8x8xf32>
    %c0_66 = arith.constant 0 : index
    %c1_67 = arith.constant 1 : index
    %c0_68 = arith.constant 0 : index
    %c0_69 = arith.constant 0 : index
    %84 = vector.load %arg11[%c0_66, %c1_67, %c0_68, %c0_69] : memref<1x4x8x8xf32, #tpu.memory_space<vmem>>, vector<1x1x8x8xf32>
    %85 = vector.shape_cast %84 : vector<1x1x8x8xf32> to vector<8x8xf32>
    %86 = vector.shape_cast %83 : vector<8x8xf32> to vector<1x1x8x8xf32>
    tpu.vector_store %arg11[%c0_66, %c1_67, %c0_68, %c0_69], %86 {strides = array<i32>} : memref<1x4x8x8xf32, #tpu.memory_space<vmem>>, vector<1x1x8x8xf32>,
    %cst_70 = arith.constant dense<0.000000e+00> : vector<8x8xf32>
    %87 = tpu.matmul %83, %69, %cst_70 {dimension_numbers = #tpu.dot_dimension_numbers<[1], [0], [0], [1], [0, 0, 1, 1], [], []>} : vector<8x8xf32>, vector<8x8xf32>, vector<8x8xf32> -> vector<8x8xf32>
    %c0_71 = arith.constant 0 : index
    %c0_72 = arith.constant 0 : index
    %88 = vector.load %arg12[%c0_71, %c0_72] : memref<8x32xf32, #tpu.memory_space<vmem>>, vector<8x32xf32>
    %c1_73 = arith.constant 1 : index
    %c0_74 = arith.constant 0 : index
    %c0_75 = arith.constant 0 : index
    %89 = vector.load %arg8[%c1_73, %c0_74, %c0_75] : memref<4x8x32xf32, #tpu.memory_space<vmem>>, vector<1x8x32xf32>
    %90 = vector.shape_cast %89 : vector<1x8x32xf32> to vector<8x32xf32>
    %cst_76 = arith.constant dense<0.000000e+00> : vector<8x32xf32>
    %91 = tpu.matmul %87, %90, %cst_76 {dimension_numbers = #tpu.dot_dimension_numbers<[1], [0], [0], [1], [0, 0, 1, 1], [], []>} : vector<8x8xf32>, vector<8x32xf32>, vector<8x32xf32> -> vector<8x32xf32>
    %92 = arith.addf %88, %91 : vector<8x32xf32>
    %c0_77 = arith.constant 0 : index
    %c0_78 = arith.constant 0 : index
    %93 = vector.load %arg12[%c0_77, %c0_78] : memref<8x32xf32, #tpu.memory_space<vmem>>, vector<8x32xf32>
    tpu.vector_store %arg12[%c0_77, %c0_78], %92 {strides = array<i32>} : memref<8x32xf32, #tpu.memory_space<vmem>>, vector<8x32xf32>,
    %c2 = arith.constant 2 : index
    %c0_79 = arith.constant 0 : index
    %c0_80 = arith.constant 0 : index
    %94 = vector.load %arg2[%c2, %c0_79, %c0_80] : memref<4x32x8xf32, #tpu.memory_space<vmem>>, vector<1x32x8xf32>
    %95 = vector.shape_cast %94 : vector<1x32x8xf32> to vector<32x8xf32>
    %cst_81 = arith.constant dense<0.000000e+00> : vector<8x8xf32>
    %96 = tpu.matmul %1, %95, %cst_81 {dimension_numbers = #tpu.dot_dimension_numbers<[1], [0], [0], [1], [0, 0, 1, 1], [], []>} : vector<8x32xf32>, vector<32x8xf32>, vector<8x8xf32> -> vector<8x8xf32>
    %c2_82 = arith.constant 2 : index
    %c0_83 = arith.constant 0 : index
    %c0_84 = arith.constant 0 : index
    %97 = vector.load %arg5[%c2_82, %c0_83, %c0_84] : memref<4x1x8xf32, #tpu.memory_space<vmem>>, vector<1x1x8xf32>
    %98 = vector.shape_cast %97 : vector<1x1x8xf32> to vector<1x8xf32>
    %99 = vector.broadcast %98 : vector<1x8xf32> to vector<8x8xf32>
    %100 = arith.addf %96, %99 : vector<8x8xf32>
    %c2_85 = arith.constant 2 : index
    %c0_86 = arith.constant 0 : index
    %c0_87 = arith.constant 0 : index
    %101 = vector.load %arg3[%c2_85, %c0_86, %c0_87] : memref<4x32x8xf32, #tpu.memory_space<vmem>>, vector<1x32x8xf32>
    %102 = vector.shape_cast %101 : vector<1x32x8xf32> to vector<32x8xf32>
    %cst_88 = arith.constant dense<0.000000e+00> : vector<8x8xf32>
    %103 = tpu.matmul %1, %102, %cst_88 {dimension_numbers = #tpu.dot_dimension_numbers<[1], [0], [0], [1], [0, 0, 1, 1], [], []>} : vector<8x32xf32>, vector<32x8xf32>, vector<8x8xf32> -> vector<8x8xf32>
    %c2_89 = arith.constant 2 : index
    %c0_90 = arith.constant 0 : index
    %c0_91 = arith.constant 0 : index
    %104 = vector.load %arg6[%c2_89, %c0_90, %c0_91] : memref<4x1x8xf32, #tpu.memory_space<vmem>>, vector<1x1x8xf32>
    %105 = vector.shape_cast %104 : vector<1x1x8xf32> to vector<1x8xf32>
    %106 = vector.broadcast %105 : vector<1x8xf32> to vector<8x8xf32>
    %107 = arith.addf %103, %106 : vector<8x8xf32>
    %c2_92 = arith.constant 2 : index
    %c0_93 = arith.constant 0 : index
    %c0_94 = arith.constant 0 : index
    %108 = vector.load %arg4[%c2_92, %c0_93, %c0_94] : memref<4x32x8xf32, #tpu.memory_space<vmem>>, vector<1x32x8xf32>
    %109 = vector.shape_cast %108 : vector<1x32x8xf32> to vector<32x8xf32>
    %cst_95 = arith.constant dense<0.000000e+00> : vector<8x8xf32>
    %110 = tpu.matmul %1, %109, %cst_95 {dimension_numbers = #tpu.dot_dimension_numbers<[1], [0], [0], [1], [0, 0, 1, 1], [], []>} : vector<8x32xf32>, vector<32x8xf32>, vector<8x8xf32> -> vector<8x8xf32>
    %c2_96 = arith.constant 2 : index
    %c0_97 = arith.constant 0 : index
    %c0_98 = arith.constant 0 : index
    %111 = vector.load %arg7[%c2_96, %c0_97, %c0_98] : memref<4x1x8xf32, #tpu.memory_space<vmem>>, vector<1x1x8xf32>
    %112 = vector.shape_cast %111 : vector<1x1x8xf32> to vector<1x8xf32>
    %113 = vector.broadcast %112 : vector<1x8xf32> to vector<8x8xf32>
    %114 = arith.addf %110, %113 : vector<8x8xf32>
    %115 = tpu.transpose %107, [1, 0] : vector<8x8xf32> -> vector<8x8xf32>
    %cst_99 = arith.constant dense<0.000000e+00> : vector<8x8xf32>
    %116 = tpu.matmul %100, %115, %cst_99 {dimension_numbers = #tpu.dot_dimension_numbers<[1], [0], [0], [1], [0, 0, 1, 1], [], []>} : vector<8x8xf32>, vector<8x8xf32>, vector<8x8xf32> -> vector<8x8xf32>
    %cst_100 = arith.constant 0.353553385 : f32
    %117 = vector.broadcast %cst_100 : f32 to vector<8x8xf32>
    %118 = arith.mulf %116, %117 : vector<8x8xf32>
    %cst_101 = arith.constant dense<0xFF800000> : vector<8xf32>
    %119 = vector.multi_reduction <maximumf>, %118, %cst_101 [1] : vector<8x8xf32> to vector<8xf32>
    %120 = vector.shape_cast %119 : vector<8xf32> to vector<8x1xf32>
    %121 = vector.broadcast %120 : vector<8x1xf32> to vector<8x8xf32>
    %122 = arith.subf %118, %121 : vector<8x8xf32>
    %123 = math.exp %122 : vector<8x8xf32>
    %cst_102 = arith.constant dense<0.000000e+00> : vector<8xf32>
    %124 = vector.multi_reduction <add>, %123, %cst_102 [1] : vector<8x8xf32> to vector<8xf32>
    %125 = vector.shape_cast %124 : vector<8xf32> to vector<8x1xf32>
    %126 = tpu.reciprocal %125 : vector<8x1xf32> -> vector<8x1xf32>
    %127 = vector.broadcast %126 : vector<8x1xf32> to vector<8x8xf32>
    %128 = arith.mulf %123, %127 : vector<8x8xf32>
    %c0_103 = arith.constant 0 : index
    %c2_104 = arith.constant 2 : index
    %c0_105 = arith.constant 0 : index
    %c0_106 = arith.constant 0 : index
    %129 = vector.load %arg11[%c0_103, %c2_104, %c0_105, %c0_106] : memref<1x4x8x8xf32, #tpu.memory_space<vmem>>, vector<1x1x8x8xf32>
    %130 = vector.shape_cast %129 : vector<1x1x8x8xf32> to vector<8x8xf32>
    %131 = vector.shape_cast %128 : vector<8x8xf32> to vector<1x1x8x8xf32>
    tpu.vector_store %arg11[%c0_103, %c2_104, %c0_105, %c0_106], %131 {strides = array<i32>} : memref<1x4x8x8xf32, #tpu.memory_space<vmem>>, vector<1x1x8x8xf32>,
    %cst_107 = arith.constant dense<0.000000e+00> : vector<8x8xf32>
    %132 = tpu.matmul %128, %114, %cst_107 {dimension_numbers = #tpu.dot_dimension_numbers<[1], [0], [0], [1], [0, 0, 1, 1], [], []>} : vector<8x8xf32>, vector<8x8xf32>, vector<8x8xf32> -> vector<8x8xf32>
    %c0_108 = arith.constant 0 : index
    %c0_109 = arith.constant 0 : index
    %133 = vector.load %arg12[%c0_108, %c0_109] : memref<8x32xf32, #tpu.memory_space<vmem>>, vector<8x32xf32>
    %c2_110 = arith.constant 2 : index
    %c0_111 = arith.constant 0 : index
    %c0_112 = arith.constant 0 : index
    %134 = vector.load %arg8[%c2_110, %c0_111, %c0_112] : memref<4x8x32xf32, #tpu.memory_space<vmem>>, vector<1x8x32xf32>
    %135 = vector.shape_cast %134 : vector<1x8x32xf32> to vector<8x32xf32>
    %cst_113 = arith.constant dense<0.000000e+00> : vector<8x32xf32>
    %136 = tpu.matmul %132, %135, %cst_113 {dimension_numbers = #tpu.dot_dimension_numbers<[1], [0], [0], [1], [0, 0, 1, 1], [], []>} : vector<8x8xf32>, vector<8x32xf32>, vector<8x32xf32> -> vector<8x32xf32>
    %137 = arith.addf %133, %136 : vector<8x32xf32>
    %c0_114 = arith.constant 0 : index
    %c0_115 = arith.constant 0 : index
    %138 = vector.load %arg12[%c0_114, %c0_115] : memref<8x32xf32, #tpu.memory_space<vmem>>, vector<8x32xf32>
    tpu.vector_store %arg12[%c0_114, %c0_115], %137 {strides = array<i32>} : memref<8x32xf32, #tpu.memory_space<vmem>>, vector<8x32xf32>,
    %c3 = arith.constant 3 : index
    %c0_116 = arith.constant 0 : index
    %c0_117 = arith.constant 0 : index
    %139 = vector.load %arg2[%c3, %c0_116, %c0_117] : memref<4x32x8xf32, #tpu.memory_space<vmem>>, vector<1x32x8xf32>
    %140 = vector.shape_cast %139 : vector<1x32x8xf32> to vector<32x8xf32>
    %cst_118 = arith.constant dense<0.000000e+00> : vector<8x8xf32>
    %141 = tpu.matmul %1, %140, %cst_118 {dimension_numbers = #tpu.dot_dimension_numbers<[1], [0], [0], [1], [0, 0, 1, 1], [], []>} : vector<8x32xf32>, vector<32x8xf32>, vector<8x8xf32> -> vector<8x8xf32>
    %c3_119 = arith.constant 3 : index
    %c0_120 = arith.constant 0 : index
    %c0_121 = arith.constant 0 : index
    %142 = vector.load %arg5[%c3_119, %c0_120, %c0_121] : memref<4x1x8xf32, #tpu.memory_space<vmem>>, vector<1x1x8xf32>
    %143 = vector.shape_cast %142 : vector<1x1x8xf32> to vector<1x8xf32>
    %144 = vector.broadcast %143 : vector<1x8xf32> to vector<8x8xf32>
    %145 = arith.addf %141, %144 : vector<8x8xf32>
    %c3_122 = arith.constant 3 : index
    %c0_123 = arith.constant 0 : index
    %c0_124 = arith.constant 0 : index
    %146 = vector.load %arg3[%c3_122, %c0_123, %c0_124] : memref<4x32x8xf32, #tpu.memory_space<vmem>>, vector<1x32x8xf32>
    %147 = vector.shape_cast %146 : vector<1x32x8xf32> to vector<32x8xf32>
    %cst_125 = arith.constant dense<0.000000e+00> : vector<8x8xf32>
    %148 = tpu.matmul %1, %147, %cst_125 {dimension_numbers = #tpu.dot_dimension_numbers<[1], [0], [0], [1], [0, 0, 1, 1], [], []>} : vector<8x32xf32>, vector<32x8xf32>, vector<8x8xf32> -> vector<8x8xf32>
    %c3_126 = arith.constant 3 : index
    %c0_127 = arith.constant 0 : index
    %c0_128 = arith.constant 0 : index
    %149 = vector.load %arg6[%c3_126, %c0_127, %c0_128] : memref<4x1x8xf32, #tpu.memory_space<vmem>>, vector<1x1x8xf32>
    %150 = vector.shape_cast %149 : vector<1x1x8xf32> to vector<1x8xf32>
    %151 = vector.broadcast %150 : vector<1x8xf32> to vector<8x8xf32>
    %152 = arith.addf %148, %151 : vector<8x8xf32>
    %c3_129 = arith.constant 3 : index
    %c0_130 = arith.constant 0 : index
    %c0_131 = arith.constant 0 : index
    %153 = vector.load %arg4[%c3_129, %c0_130, %c0_131] : memref<4x32x8xf32, #tpu.memory_space<vmem>>, vector<1x32x8xf32>
    %154 = vector.shape_cast %153 : vector<1x32x8xf32> to vector<32x8xf32>
    %cst_132 = arith.constant dense<0.000000e+00> : vector<8x8xf32>
    %155 = tpu.matmul %1, %154, %cst_132 {dimension_numbers = #tpu.dot_dimension_numbers<[1], [0], [0], [1], [0, 0, 1, 1], [], []>} : vector<8x32xf32>, vector<32x8xf32>, vector<8x8xf32> -> vector<8x8xf32>
    %c3_133 = arith.constant 3 : index
    %c0_134 = arith.constant 0 : index
    %c0_135 = arith.constant 0 : index
    %156 = vector.load %arg7[%c3_133, %c0_134, %c0_135] : memref<4x1x8xf32, #tpu.memory_space<vmem>>, vector<1x1x8xf32>
    %157 = vector.shape_cast %156 : vector<1x1x8xf32> to vector<1x8xf32>
    %158 = vector.broadcast %157 : vector<1x8xf32> to vector<8x8xf32>
    %159 = arith.addf %155, %158 : vector<8x8xf32>
    %160 = tpu.transpose %152, [1, 0] : vector<8x8xf32> -> vector<8x8xf32>
    %cst_136 = arith.constant dense<0.000000e+00> : vector<8x8xf32>
    %161 = tpu.matmul %145, %160, %cst_136 {dimension_numbers = #tpu.dot_dimension_numbers<[1], [0], [0], [1], [0, 0, 1, 1], [], []>} : vector<8x8xf32>, vector<8x8xf32>, vector<8x8xf32> -> vector<8x8xf32>
    %cst_137 = arith.constant 0.353553385 : f32
    %162 = vector.broadcast %cst_137 : f32 to vector<8x8xf32>
    %163 = arith.mulf %161, %162 : vector<8x8xf32>
    %cst_138 = arith.constant dense<0xFF800000> : vector<8xf32>
    %164 = vector.multi_reduction <maximumf>, %163, %cst_138 [1] : vector<8x8xf32> to vector<8xf32>
    %165 = vector.shape_cast %164 : vector<8xf32> to vector<8x1xf32>
    %166 = vector.broadcast %165 : vector<8x1xf32> to vector<8x8xf32>
    %167 = arith.subf %163, %166 : vector<8x8xf32>
    %168 = math.exp %167 : vector<8x8xf32>
    %cst_139 = arith.constant dense<0.000000e+00> : vector<8xf32>
    %169 = vector.multi_reduction <add>, %168, %cst_139 [1] : vector<8x8xf32> to vector<8xf32>
    %170 = vector.shape_cast %169 : vector<8xf32> to vector<8x1xf32>
    %171 = tpu.reciprocal %170 : vector<8x1xf32> -> vector<8x1xf32>
    %172 = vector.broadcast %171 : vector<8x1xf32> to vector<8x8xf32>
    %173 = arith.mulf %168, %172 : vector<8x8xf32>
    %c0_140 = arith.constant 0 : index
    %c3_141 = arith.constant 3 : index
    %c0_142 = arith.constant 0 : index
    %c0_143 = arith.constant 0 : index
    %174 = vector.load %arg11[%c0_140, %c3_141, %c0_142, %c0_143] : memref<1x4x8x8xf32, #tpu.memory_space<vmem>>, vector<1x1x8x8xf32>
    %175 = vector.shape_cast %174 : vector<1x1x8x8xf32> to vector<8x8xf32>
    %176 = vector.shape_cast %173 : vector<8x8xf32> to vector<1x1x8x8xf32>
    tpu.vector_store %arg11[%c0_140, %c3_141, %c0_142, %c0_143], %176 {strides = array<i32>} : memref<1x4x8x8xf32, #tpu.memory_space<vmem>>, vector<1x1x8x8xf32>,
    %cst_144 = arith.constant dense<0.000000e+00> : vector<8x8xf32>
    %177 = tpu.matmul %173, %159, %cst_144 {dimension_numbers = #tpu.dot_dimension_numbers<[1], [0], [0], [1], [0, 0, 1, 1], [], []>} : vector<8x8xf32>, vector<8x8xf32>, vector<8x8xf32> -> vector<8x8xf32>
    %c0_145 = arith.constant 0 : index
    %c0_146 = arith.constant 0 : index
    %178 = vector.load %arg12[%c0_145, %c0_146] : memref<8x32xf32, #tpu.memory_space<vmem>>, vector<8x32xf32>
    %c3_147 = arith.constant 3 : index
    %c0_148 = arith.constant 0 : index
    %c0_149 = arith.constant 0 : index
    %179 = vector.load %arg8[%c3_147, %c0_148, %c0_149] : memref<4x8x32xf32, #tpu.memory_space<vmem>>, vector<1x8x32xf32>
    %180 = vector.shape_cast %179 : vector<1x8x32xf32> to vector<8x32xf32>
    %cst_150 = arith.constant dense<0.000000e+00> : vector<8x32xf32>
    %181 = tpu.matmul %177, %180, %cst_150 {dimension_numbers = #tpu.dot_dimension_numbers<[1], [0], [0], [1], [0, 0, 1, 1], [], []>} : vector<8x8xf32>, vector<8x32xf32>, vector<8x32xf32> -> vector<8x32xf32>
    %182 = arith.addf %178, %181 : vector<8x32xf32>
    %c0_151 = arith.constant 0 : index
    %c0_152 = arith.constant 0 : index
    %183 = vector.load %arg12[%c0_151, %c0_152] : memref<8x32xf32, #tpu.memory_space<vmem>>, vector<8x32xf32>
    tpu.vector_store %arg12[%c0_151, %c0_152], %182 {strides = array<i32>} : memref<8x32xf32, #tpu.memory_space<vmem>>, vector<8x32xf32>,
    %c0_153 = arith.constant 0 : index
    %c0_154 = arith.constant 0 : index
    %184 = vector.load %arg12[%c0_153, %c0_154] : memref<8x32xf32, #tpu.memory_space<vmem>>, vector<8x32xf32>
    %c0_155 = arith.constant 0 : index
    %c0_156 = arith.constant 0 : index
    %185 = vector.load %arg9[%c0_155, %c0_156] : memref<1x32xf32, #tpu.memory_space<vmem>>, vector<1x32xf32>
    %186 = vector.broadcast %185 : vector<1x32xf32> to vector<8x32xf32>
    %187 = arith.addf %184, %186 : vector<8x32xf32>
    %c0_157 = arith.constant 0 : index
    %c0_158 = arith.constant 0 : index
    %c0_159 = arith.constant 0 : index
    %188 = vector.load %arg10[%c0_157, %c0_158, %c0_159] : memref<1x8x32xf32, #tpu.memory_space<vmem>>, vector<1x8x32xf32>
    %189 = vector.shape_cast %188 : vector<1x8x32xf32> to vector<8x32xf32>
    %190 = vector.shape_cast %187 : vector<8x32xf32> to vector<1x8x32xf32>
    tpu.vector_store %arg10[%c0_157, %c0_158, %c0_159], %190 {strides = array<i32>} : memref<1x8x32xf32, #tpu.memory_space<vmem>>, vector<1x8x32xf32>,
    return
  }
  func.func @transform_0(%arg0: i32) -> (i32, i32, i32) {
    %c0_i32 = arith.constant 0 : i32
    %c0_i32_0 = arith.constant 0 : i32
    %c0_i32_1 = arith.constant 0 : i32
    return %arg0, %c0_i32, %c0_i32_0 : i32, i32, i32
  }
  func.func @transform_1(%arg0: i32) -> (i32, i32, i32) {
    %c0_i32 = arith.constant 0 : i32
    %c0_i32_0 = arith.constant 0 : i32
    %c0_i32_1 = arith.constant 0 : i32
    %c0_i32_2 = arith.constant 0 : i32
    return %c0_i32, %c0_i32_0, %c0_i32_1 : i32, i32, i32
  }
  func.func @transform_2(%arg0: i32) -> (i32, i32, i32) {
    %c0_i32 = arith.constant 0 : i32
    %c0_i32_0 = arith.constant 0 : i32
    %c0_i32_1 = arith.constant 0 : i32
    %c0_i32_2 = arith.constant 0 : i32
    return %c0_i32, %c0_i32_0, %c0_i32_1 : i32, i32, i32
  }
  func.func @transform_3(%arg0: i32) -> (i32, i32, i32) {
    %c0_i32 = arith.constant 0 : i32
    %c0_i32_0 = arith.constant 0 : i32
    %c0_i32_1 = arith.constant 0 : i32
    %c0_i32_2 = arith.constant 0 : i32
    return %c0_i32, %c0_i32_0, %c0_i32_1 : i32, i32, i32
  }
  func.func @transform_4(%arg0: i32) -> (i32, i32, i32) {
    %c0_i32 = arith.constant 0 : i32
    %c0_i32_0 = arith.constant 0 : i32
    %c0_i32_1 = arith.constant 0 : i32
    %c0_i32_2 = arith.constant 0 : i32
    return %c0_i32, %c0_i32_0, %c0_i32_1 : i32, i32, i32
  }
  func.func @transform_5(%arg0: i32) -> (i32, i32, i32) {
    %c0_i32 = arith.constant 0 : i32
    %c0_i32_0 = arith.constant 0 : i32
    %c0_i32_1 = arith.constant 0 : i32
    %c0_i32_2 = arith.constant 0 : i32
    return %c0_i32, %c0_i32_0, %c0_i32_1 : i32, i32, i32
  }
  func.func @transform_6(%arg0: i32) -> (i32, i32, i32) {
    %c0_i32 = arith.constant 0 : i32
    %c0_i32_0 = arith.constant 0 : i32
    %c0_i32_1 = arith.constant 0 : i32
    %c0_i32_2 = arith.constant 0 : i32
    return %c0_i32, %c0_i32_0, %c0_i32_1 : i32, i32, i32
  }
  func.func @transform_7(%arg0: i32) -> (i32, i32, i32) {
    %c0_i32 = arith.constant 0 : i32
    %c0_i32_0 = arith.constant 0 : i32
    %c0_i32_1 = arith.constant 0 : i32
    %c0_i32_2 = arith.constant 0 : i32
    return %c0_i32, %c0_i32_0, %c0_i32_1 : i32, i32, i32
  }
  func.func @transform_8(%arg0: i32) -> (i32, i32) {
    %c0_i32 = arith.constant 0 : i32
    %c0_i32_0 = arith.constant 0 : i32
    %c0_i32_1 = arith.constant 0 : i32
    return %c0_i32, %c0_i32_0 : i32, i32
  }
  func.func @transform_9(%arg0: i32) -> (i32, i32, i32) {
    %c0_i32 = arith.constant 0 : i32
    %c0_i32_0 = arith.constant 0 : i32
    %c0_i32_1 = arith.constant 0 : i32
    return %arg0, %c0_i32, %c0_i32_0 : i32, i32, i32
  }
  func.func @transform_10(%arg0: i32) -> (i32, i32, i32, i32) {
    %c0_i32 = arith.constant 0 : i32
    %c0_i32_0 = arith.constant 0 : i32
    %c0_i32_1 = arith.constant 0 : i32
    %c0_i32_2 = arith.constant 0 : i32
    return %arg0, %c0_i32, %c0_i32_0, %c0_i32_1 : i32, i32, i32, i32
  }
}

</mosaic_0001>

<bundles_post_ra>
// kernel: tpu_custom_call.1
= control target key start
LH: loop header
LB: loop body
LE: loop exit
PB: predicated region body
PF: predicated region fallthrough
CT: control target
= control target key end

     0   :  { %s1969_s0 = inlined_call_operand.vmem [shape: f32[2,8,32], index: 0, kind: input, shape index: {}]   ;;  %s1970_s1 = inlined_call_operand.vmem [shape: f32[4,32,8], index: 1, kind: input, shape index: {}]   ;;  %s1971_s2 = inlined_call_operand.vmem [shape: f32[4,32,8], index: 2, kind: input, shape index: {}]   ;;  %s1972_s3 = inlined_call_operand.vmem [shape: f32[4,32,8], index: 3, kind: input, shape index: {}]   ;;  %s1973_s4 = inlined_call_operand.vmem [shape: f32[4,1,8], index: 4, kind: input, shape index: {}]   ;;  %s1974_s5 = inlined_call_operand.vmem [shape: f32[4,1,8], index: 5, kind: input, shape index: {}]   ;;  %s1975_s6 = inlined_call_operand.vmem [shape: f32[4,1,8], index: 6, kind: input, shape index: {}]   ;;  %s1976_s7 = inlined_call_operand.vmem [shape: f32[4,8,32], index: 7, kind: input, shape index: {}]   ;;  %s1977_s8 = inlined_call_operand.vmem [shape: f32[1,32], index: 8, kind: input, shape index: {}]   ;;  %s1978_s9 = inlined_call_operand.hbm [shape: f32[2,8,32], index: 9, kind: output, shape index: {0}]   ;;  %s1979_s10 = inlined_call_operand.hbm [shape: f32[2,4,8,8], index: 10, kind: output, shape index: {1}]  }
   0x1   :  { %1980 = sst [smem:[#allocation9_spill]] %s1969_s0 }
   0x2   :  { %1981 = sst [smem:[#allocation10_spill]] %s1970_s1 }
   0x3   :  { %1982 = sst [smem:[#allocation11_spill]] %s1971_s2 }
   0x4   :  { %1983 = sst [smem:[#allocation12_spill]] %s1972_s3 }
   0x5   :  { %1984 = sst [smem:[#allocation13_spill]] %s1973_s4 }
   0x6   :  { %16 = vsyncpa [#allocation4], 0 }
   0x7   :  { %18 = vsyncpa [#allocation4 + $0x1], 0 }
   0x8   :  { %19 = vsyncpa [#allocation6], 0 }
   0x9   :  { %21 = vsyncpa [#allocation6 + $0x1], 0  ;;  %s1602_s13 = smov 0   ;;  %s1604_s14 = smov 0  }
   0xa   :  { %s1606_s15 = smov 0   ;;  %s1608_s16 = smov 0  }
   0xb LB: > { %s1623_s17 = sadd.s32 4294967295, %s1542_s16   ;;  %s1278_s18 = sadd.s32 4294967294, %s1542_s16   ;;  %s1542_s16 = sphi %s1608_s16, %s1995_s16   ;;  %s1538_s15 = sphi %s1606_s15, %s1994_s15   ;;  %s1534_s14 = sphi %s1604_s14, %s1993_s14   ;;  %s1530_s13 = sphi %s1602_s13, %s1992_s13  }
   0xc   : > { %s1627_s19 = sadd.s32 1, %s1542_s16   ;;  %s228_s20 = sadd.s32 1, %s1538_s15 }
   0xd   : > { %s225_s21 = ssub.s32 %s1542_s16, %s1627_s19  ;;  %p238_p0 = scmp.ne.s32.totalorder %s1538_s15, %s1534_s14 }
   0xe   : > { %p226_p1 = scmp.eq.s32.totalorder %s225_s21, 0  ;;  %p239_p2 = scmp.eq.s32.totalorder %s1623_s17, 1 }
   0xf   : > { %p244_p3 = scmp.ne.s32.totalorder %s1534_s14, %s1530_s13  ;;  %p245_p4 = scmp.eq.s32.totalorder %s1278_s18, 1 }
  0x10   : > { %s1638_s22 = scalar_select %p226_p1, %s1538_s15, %s228_s20  }
  0x11   : > { %p1640_p5 = por %p239_p2, %p238_p0  ;;  %p1644_p6 = por %p245_p4, %p244_p3 }
  0x12   : > { %p1281_p7 = scmp.ge.s32.totalorder %s1542_s16, 1  ;;  %p320_p8 = scmp.lt.s32.totalorder %s1542_s16, 3 }
  0x14   : > { %p321_p9 = pnand %p1281_p7, %p320_p8 }
  0x15   : > { %s1987_s2 = sld [smem:[#allocation11_spill]] (!%p321_p9)  ;;  %p362_p10 = scmp.lt.s32.totalorder (!%p321_p9), %s1623_s17, 1 }
  0x16   : > { %324 = sbr.rel (%p321_p9) target bundleno = 2433 (0x981), region = 56  ;;  %s1988_s1 = sld [smem:[#allocation10_spill]] (!%p321_p9) }
  0x17   : > { %s1989_s0 = sld [smem:[#allocation9_spill]] (!%p321_p9) }
  0x18   : > { %s1990_s4 = sld [smem:[#allocation13_spill]] (!%p321_p9) }
  0x19   : > { %s1991_s3 = sld [smem:[#allocation12_spill]] (!%p321_p9) }
  0x1b   : > { %v403_v0 = vld [vmem:[%s1987_s2 + $0x18] sm:$0xff]  ;;  %v402_v1 = vld [vmem:[%s1987_s2 + $0x10] sm:$0xff]  ;;  %v401_v4 = vld [vmem:[%s1987_s2 + $0x8] sm:$0xff]  ;;  %s363_s26 = scalar_select %p362_p10, %s1623_s17, 1  ;;  %vm367_vm0 = vcmask 261120   ;;  %vm456_vm1 = vcmask 64512  }
  0x1c   : > { %v372_v2 = vld [vmem:[%s1988_s1 + $0x18] sm:$0xff]  ;;  %420 = vmatpush.msra.mxu1 %v403_v0  ;;  %v371_v3 = vld [vmem:[%s1988_s1 + $0x10] sm:$0xff]  ;;  %v370_v5 = vld [vmem:[%s1988_s1 + $0x8] sm:$0xff]  ;;  %v1544_v54 = vmov 0.0  }
  0x1d   : > { %392 = vmatpush.msra.mxu0 %v372_v2  ;;  %v400_v6 = vld [vmem:[%s1987_s2] sm:$0xff]  ;;  %s1284_s29 = sshll.u32 %s363_s26, 3  ;;  %v1301_v29 = vld [vmem:[%s1987_s2 + $0x38] sm:$0xff]  ;;  %v1300_v30 = vld [vmem:[%s1987_s2 + $0x30] sm:$0xff]  ;;  %368 = vst.msk [vmem:[#allocation2] sm:$0xff] %vm367_vm0, %v1544_v54 }
  0x1e   : > { %421 = vmatpush.msra.mxu1 %v402_v1  ;;  %v369_v7 = vld [vmem:[%s1988_s1] sm:$0xff]  ;;  %s365_s20 = scalar_lea.vmem %s1989_s0, %s1284_s29  ;;  %v1299_v32 = vld [vmem:[%s1987_s2 + $0x28] sm:$0xff]  ;;  %v1295_v34 = vld [vmem:[%s1988_s1 + $0x38] sm:$0xff]  ;;  %s1371_s0 = sshll.u32 %s1623_s17, 5 }
  0x1f   : > { %393 = vmatpush.msra.mxu0 %v371_v3  ;;  %v1679_v8 = vld [vmem:[%s365_s20] sm:$0xff]  ;;  %v431_v15 = vld [vmem:[%s1991_s3 + $0x18] sm:$0xff]  ;;  %v430_v19 = vld [vmem:[%s1991_s3 + $0x10] sm:$0xff]  ;;  %s1744_s20 = sand.u32 1, %s1534_s14   ;;  %s1179_s30 = scalar_lea.hbm %s1979_s10, %s1371_s0 }
  0x20   : > { %422 = vmatpush.msra.mxu1 %v401_v4  ;;  %v1419_v9 = vld [vmem:[%s1974_s5] ss:$0 sm:$0xff]  ;;  %448 = vmatpush.msra.mxu2 %v431_v15  ;;  %v429_v20 = vld [vmem:[%s1991_s3 + $0x8] sm:$0xff]  ;;  %v1294_v35 = vld [vmem:[%s1988_s1 + $0x30] sm:$0xff]  ;;  %s1283_s21 = sshll.u32 %s1744_s20, 5  ;;  %s1182_s12 = sshll.u32 %s1179_s30, 4  ;;  %s1183_s12 = int_to_ptr.hbm [resolvable:$true] %s1182_s12 }
  0x21   : > { %394 = vmatpush.msra.mxu0 %v370_v5  ;;  %v1420_v10 = vld [vmem:[%s1990_s4] ss:$0 sm:$0xff]  ;;  %v1293_v37 = vld [vmem:[%s1988_s1 + $0x28] sm:$0xff]  ;;  %s1748_s25 = scalar_lea.vmem [#allocation5], %s1283_s21  ;;  %v1422_v51 = vld [vmem:[%s1974_s5 + $0x1] ss:$0 sm:$0xff] }
  0x22   : > { %423 = vmatpush.msra.mxu1 %v400_v6  ;;  %449 = vmatpush.msra.mxu2 %v430_v19  ;;  %v428_v21 = vld [vmem:[%s1991_s3] sm:$0xff]  ;;  %v1307_v59 = vld [vmem:[%s1991_s3 + $0x38] sm:$0xff]  ;;  %v1306_v2 = vld [vmem:[%s1991_s3 + $0x30] sm:$0xff]  ;;  %s1180_s11 = sshll.u32 %s1748_s25, 4  ;;  %s1154_s18 = scalar_lea.sflag [#allocation6], %s1744_s20  ;;  %s1181_s11 = int_to_ptr.vmem [resolvable:$true] %s1180_s11 }
  0x23   : > { %395 = vmatpush.msra.mxu0 %v369_v7  ;;  %1286 = vmatmul.msk.f32.vlgmr.msra.gmra.mxu1 %vm367_vm0, %v1679_v8  ;;  %v1421_v27 = vld [vmem:[%s1975_s6] ss:$0 sm:$0xff]  ;;  %v1423_v56 = vld [vmem:[%s1990_s4 + $0x1] ss:$0 sm:$0xff]  ;;  %v1305_v3 = vld [vmem:[%s1991_s3 + $0x28] sm:$0xff]  ;;  %s1462_s21 = sshra.s32 %s1183_s12, 4  ;;  %s1463_s21 = int_to_ptr.hbm [resolvable:$true] %s1462_s21 }
  0x24   : > { %1285 = vmatmul.msk.f32.vlgmr.msra.gmra.mxu0 %vm367_vm0, %v1679_v8  ;;  %450 = vmatpush.msra.mxu2 %v429_v20  ;;  %v1298_v33 = vld [vmem:[%s1987_s2 + $0x20] sm:$0xff]  ;;  %v1323_v19 = vld [vmem:[%s1987_s2 + $0x48] sm:$0xff]  ;;  %s1464_s26 = scalar_lea.hbm %s1463_s21, 32  ;;  %p1469_p0 = scmp.lt.s32.totalorder %s1463_s21, %s1979_s10 }
  0x25   : > { %581 = vmatpush.msrb.mxu1 %v1295_v34  ;;  %v533_v36 = vld [vmem:[%s1976_s7] sm:$0xff]  ;;  %p1465_p11 = scmp.ne.s32.totalorder %s1463_s21, %s1464_s26 }
  0x26   : > { %451 = vmatpush.msra.mxu2 %v428_v21  ;;  %552 = vmatpush.msrb.mxu0 %v533_v36  ;;  %v1292_v38 = vld [vmem:[%s1988_s1 + $0x20] sm:$0xff] }
  0x27   : > { %1287 = vmatmul.msk.f32.vlgmr.msra.gmra.mxu2 %vm367_vm0, %v1679_v8  ;;  %582 = vmatpush.msrb.mxu1 %v1294_v35  ;;  %v532_v60 = vld [vmem:[#allocation2] sm:$0xff]  ;;  %p1466_p12 = pnand %p1465_p11, %p1640_p5 }
  0x28   : > { %611 = vmatpush.msrb.mxu2 %v1301_v29  ;;  %v1304_v4 = vld [vmem:[%s1991_s3 + $0x20] sm:$0xff] }
  0x29   : > { %583 = vmatpush.msrb.mxu1 %v1293_v37  ;;  %v1316_v20 = vld [vmem:[%s1988_s1 + $0x40] sm:$0xff]  ;;  %p1467_p13 = pneg %p1466_p12 }
  0x2a   : > { %612 = vmatpush.msrb.mxu2 %v1300_v30  ;;  %v1322_v21 = vld [vmem:[%s1987_s2 + $0x40] sm:$0xff] }
  0x2b   : > { %584 = vmatpush.msrb.mxu1 %v1292_v38  ;;  %v1425_v35 = vld [vmem:[%s1974_s5 + $0x2] ss:$0 sm:$0xff] }
  0x2c   : > { %613 = vmatpush.msrb.mxu2 %v1299_v32  ;;  %1297 = vmatmul.msk.f32.vlgmr.msrb.gmra.mxu1 %vm367_vm0, %v1679_v8 }
  0x2e   : > { %614 = vmatpush.msrb.mxu2 %v1298_v33 }
  0x2f   : > { %1303 = vmatmul.msk.f32.vlgmr.msrb.gmra.mxu2 %vm367_vm0, %v1679_v8 }
  0xa0   : > { %v425_v11 = vpop.f32.mrf.mxu1 }
  0xa1   : > { %v397_v12 = vpop.f32.mrf.mxu0  ;;  %v426_v13 = vadd.f32 %v1419_v9, %v425_v11  ;;  %v1319_v11 = vld [vmem:[%s1988_s1 + $0x58] sm:$0xff] }
  0xa2   : > { %v398_v14 = vadd.f32 %v1420_v10, %v397_v12  ;;  %v1318_v12 = vld [vmem:[%s1988_s1 + $0x50] sm:$0xff] }
  0xa3   : > { %1288 = vmatpush.xpose.msk.msra.mxu3 %vm456_vm1, %v426_v13  ;;  %v1424_v13 = vld [vmem:[%s1975_s6 + $0x1] ss:$0 sm:$0xff] }
  0xa6   : > { %1289 = vmatmul.msk.f32.vlgmr.msra.gmra.mxu3 %vm456_vm1, %v398_v14  ;;  %v1325_v14 = vld [vmem:[%s1987_s2 + $0x58] sm:$0xff] }
  0xa9   : > { %v586_v57 = vpop.f32.mrf.mxu1 }
  0xaa   : > { %v453_v28 = vpop.f32.mrf.mxu2  ;;  %v587_v58 = vadd.f32 %v1423_v56, %v586_v57  ;;  %v1427_v57 = vld [vmem:[%s1975_s6 + $0x2] ss:$0 sm:$0xff] }
  0xab   : > { %v454_v31 = vadd.f32 %v1421_v27, %v453_v28 }
  0xad   : > { %527 = vmatpush.msrb.mxu3 %v454_v31 }
  0xaf   : > { %641 = vmatpush.msra.mxu3 %v1307_v59 }
  0xb1   : > { %642 = vmatpush.msra.mxu3 %v1306_v2  ;;  %v1338_v2 = vld [vmem:[%s1976_s7 + $0x10] sm:$0xff] }
  0xb2   : > { %v616_v52 = vpop.f32.mrf.mxu2 }
  0xb3   : > { %v617_v53 = vadd.f32 %v1422_v51, %v616_v52  ;;  %643 = vmatpush.msra.mxu3 %v1305_v3  ;;  %v1328_v51 = vld [vmem:[%s1991_s3 + $0x40] sm:$0xff]  ;;  %v1341_v3 = vld [vmem:[%s1988_s1 + $0x68] sm:$0xff] }
  0xb5   : > { %1310 = vmatpush.xpose.msk.msra.mxu0 %vm456_vm1, %v617_v53  ;;  %644 = vmatpush.msra.mxu3 %v1304_v4  ;;  %v1340_v4 = vld [vmem:[%s1988_s1 + $0x60] sm:$0xff] }
 0x129   : > { %v480_v16 = vpop.f32.mrf.mxu3 }
 0x12a   : > { %v483_v17 = vmul.f32 0.35355338, %v480_v16  ;;  %v1317_v16 = vld [vmem:[%s1988_s1 + $0x48] sm:$0xff] }
 0x12c   : > { %v484_v18 = vsel %vm456_vm1, %v483_v17, -inf }
 0x12d   : > { %485 = vmax.xlane.f32.xlu0 %v484_v18  ;;  %v1324_v18 = vld [vmem:[%s1987_s2 + $0x50] sm:$0xff] }
 0x1a0   : > { %v486_v22 = vpop.xlane.xlu0 %485 }
 0x1a1   : > { %v487_v23 = vsub.f32 %v483_v17, %v486_v22  ;;  %v1314_v22 = vld [vmem:[%s1976_s7 + $0x8] sm:$0xff] }
 0x1a2   : > { %746 = vmatpush.msra.mxu2 %v1314_v22  ;;  %v1429_v22 = vld [vmem:[%s1990_s4 + $0x3] ss:$0 sm:$0xff] }
 0x1a3   : > { %v488_v24 = vmul.f32 1.442695, %v487_v23 }
 0x1a5   : > { %1432 = vpow2.f32 %v488_v24 }
 0x1ab   : > { %v1433_v25 = vpop.eup %1432 }
 0x1ac   : > { %v490_v26 = vsel %vm456_vm1, %v1433_v25, 0.0 }
 0x1ad   : > { %491 = vadd.xlane.f32.xlu0 %v490_v26 }
 0x220   : > { %v492_v39 = vpop.xlane.xlu0 %491 }
 0x221   : > { %1434 = vrcp.f32 %v492_v39  ;;  %v504_v43 = vand.u32 2147483648, %v492_v39  ;;  %v502_v45 = vand.u32 2147483647, %v492_v39  ;;  %vm498_vm3 = vweird.f32 %v492_v39 }
 0x223   : > { %v505_v47 = vor.u32 1.1754944e-38, %v504_v43  ;;  %vm503_vm5 = vcmp.eq.f32.partialorder %v502_v45, 8.507059e+37 }
 0x227   : > { %v1435_v40 = vpop.eup %1434 }
 0x228   : > { %v494_v41 = vmul.f32 %v1435_v40, %v492_v39  ;;  %vm499_vm2 = vweird.f32 %v1435_v40  ;;  %v1426_v39 = vld [vmem:[%s1990_s4 + $0x2] ss:$0 sm:$0xff] }
 0x229   : > { %vm500_vm4 = vmor %vm498_vm3, %vm499_vm2 }
 0x22a   : > { %v495_v42 = vsub.f32 1.0, %v494_v41 }
 0x22c   : > { %v496_v44 = vmul.f32 %v1435_v40, %v495_v42 }
 0x22e   : > { %v497_v46 = vadd.f32 %v1435_v40, %v496_v44 }
 0x230   : > { %v501_v48 = vsel %vm500_vm4, %v1435_v40, %v497_v46 }
 0x231   : > { %v506_v49 = vsel %vm503_vm5, %v505_v47, %v501_v48  ;;  %v1331_v48 = vld [vmem:[%s1991_s3 + $0x58] sm:$0xff] }
 0x232   : > { %v507_v50 = vmul.f32 %v1433_v25, %v506_v49  ;;  %v1330_v49 = vld [vmem:[%s1991_s3 + $0x50] sm:$0xff] }
 0x234   : > { %1290 = vmatmul.msk.f32.vlgmr.msrb.gmra.mxu3 %vm456_vm1, %v507_v50  ;;  %508 = vst.msk [vmem:[%s1748_s25] sm:$0xff] %vm456_vm1, %v507_v50  ;;  %v1329_v50 = vld [vmem:[%s1991_s3 + $0x48] sm:$0xff] }
 0x235   : > { %775 = vmatpush.msrb.mxu3 %v1319_v11 }
 0x237   : > { %776 = vmatpush.msrb.mxu3 %v1318_v12 }
 0x239   : > { %777 = vmatpush.msrb.mxu3 %v1317_v16 }
 0x23b   : > { %778 = vmatpush.msrb.mxu3 %v1316_v20 }
 0x23c   : > { %1309 = vmatmul.msk.f32.vlgmr.msra.gmra.mxu3 %vm367_vm0, %v1679_v8 }
 0x244   : > { %1321 = vmatmul.msk.f32.vlgmr.msrb.gmra.mxu3 %vm367_vm0, %v1679_v8 }
 0x2b7   : > { %v529_v55 = vpop.f32.mrf.mxu3 }
 0x2b8   : > { %1291 = vmatmul.msk.f32.vlgmr.msrb.gmra.mxu0 %vm456_vm1, %v529_v55 }
 0x2b9   : > { %805 = vmatpush.msrb.mxu0 %v1325_v14 }
 0x2bb   : > { %806 = vmatpush.msrb.mxu0 %v1324_v18  ;;  %v1428_v18 = vld [vmem:[%s1974_s5 + $0x3] ss:$0 sm:$0xff] }
 0x2bd   : > { %807 = vmatpush.msrb.mxu0 %v1323_v19 }
 0x2bf   : > { %v646_v15 = vpop.f32.mrf.mxu3  ;;  %808 = vmatpush.msrb.mxu0 %v1322_v21 }
 0x2c0   : > { %1311 = vmatmul.msk.f32.vlgmr.msra.gmra.mxu0 %vm456_vm1, %v587_v58  ;;  %v647_v17 = vadd.f32 %v1424_v13, %v646_v15  ;;  %v1349_v58 = vld [vmem:[%s1987_s2 + $0x78] sm:$0xff] }
 0x2c1   : > { %940 = vmatpush.msra.mxu0 %v1338_v2 }
 0x2c2   : > { %720 = vmatpush.msra.mxu1 %v647_v17 }
 0x2c4   : > { %835 = vmatpush.msrb.mxu1 %v1331_v48 }
 0x2c6   : > { %836 = vmatpush.msrb.mxu1 %v1330_v49 }
 0x2c7   : > { %v780_v40 = vpop.f32.mrf.mxu3 }
 0x2c8   : > { %1327 = vmatmul.msk.f32.vlgmr.msrb.gmra.mxu0 %vm367_vm0, %v1679_v8  ;;  %v781_v41 = vadd.f32 %v1426_v39, %v780_v40  ;;  %837 = vmatpush.msrb.mxu1 %v1329_v50  ;;  %v1430_v40 = vld [vmem:[%s1975_s6 + $0x3] ss:$0 sm:$0xff] }
 0x2ca   : > { %838 = vmatpush.msrb.mxu1 %v1328_v51 }
 0x335   : > { %v554_v61 = vpop.f32.mrf.mxu0 }
 0x336   : > { %v557_v62 = vadd.f32 %v554_v61, %v532_v60  ;;  %v1348_v61 = vld [vmem:[%s1987_s2 + $0x70] sm:$0xff] }
 0x338   : > { %558 = vst.msk [vmem:[#allocation2] sm:$0xff] %vm367_vm0, %v557_v62  ;;  %v1347_v62 = vld [vmem:[%s1987_s2 + $0x68] sm:$0xff] }
 0x33d   : > { %v672_v63 = vpop.f32.mrf.mxu0 }
 0x33e   : > { %v675_v0 = vmul.f32 0.35355338, %v672_v63  ;;  %v1346_v63 = vld [vmem:[%s1987_s2 + $0x60] sm:$0xff]  ;;  %s1468_s2 = scalar_lea.hbm %s1979_s10, 64 }
 0x33f   : > { %v725_v42 = vld [vmem:[#allocation2] sm:$0xff]  ;;  %p1470_p1 = scmp.lt.s32.totalorder %s1468_s2, %s1464_s26 }
 0x340   : > { %v676_v1 = vsel %vm456_vm1, %v675_v0, -inf }
 0x341   : > { %677 = vmax.xlane.f32.xlu1 %v676_v1  ;;  %v1342_v1 = vld [vmem:[%s1988_s1 + $0x70] sm:$0xff]  ;;  %p1471_p2 = por %p1470_p1, %p1469_p0 }
 0x343   : > { %p1472_p3 = pnand %p1471_p2, %p1467_p13 }
 0x345   : > { %v810_v36 = vpop.f32.mrf.mxu0 }
 0x346   : > { %v811_v37 = vadd.f32 %v1425_v35, %v810_v36 }
 0x348   : > { %1334 = vmatpush.xpose.msk.msrb.mxu2 %vm456_vm1, %v811_v37 }
 0x3b4   : > { %v678_v5 = vpop.xlane.xlu1 %677 }
 0x3b5   : > { %v679_v6 = vsub.f32 %v675_v0, %v678_v5  ;;  %v1343_v0 = vld [vmem:[%s1988_s1 + $0x78] sm:$0xff] }
 0x3b7   : > { %v680_v7 = vmul.f32 1.442695, %v679_v6 }
 0x3b9   : > { %1436 = vpow2.f32 %v680_v7 }
 0x3bf   : > { %v1437_v9 = vpop.eup %1436 }
 0x3c0   : > { %v682_v10 = vsel %vm456_vm1, %v1437_v9, 0.0 }
 0x3c1   : > { %683 = vadd.xlane.f32.xlu1 %v682_v10 }
 0x434   : > { %v684_v23 = vpop.xlane.xlu1 %683 }
 0x435   : > { %1438 = vrcp.f32 %v684_v23  ;;  %v696_v27 = vand.u32 2147483648, %v684_v23  ;;  %v694_v29 = vand.u32 2147483647, %v684_v23  ;;  %vm690_vm7 = vweird.f32 %v684_v23 }
 0x437   : > { %v697_v31 = vor.u32 1.1754944e-38, %v696_v27  ;;  %vm695_vm9 = vcmp.eq.f32.partialorder %v694_v29, 8.507059e+37 }
 0x43b   : > { %v1439_v24 = vpop.eup %1438 }
 0x43c   : > { %v686_v25 = vmul.f32 %v1439_v24, %v684_v23  ;;  %vm691_vm6 = vweird.f32 %v1439_v24 }
 0x43d   : > { %vm692_vm8 = vmor %vm690_vm7, %vm691_vm6 }
 0x43e   : > { %v687_v26 = vsub.f32 1.0, %v686_v25  ;;  %v1355_v25 = vld [vmem:[%s1991_s3 + $0x78] sm:$0xff] }
 0x440   : > { %v688_v28 = vmul.f32 %v1439_v24, %v687_v26 }
 0x442   : > { %v689_v30 = vadd.f32 %v1439_v24, %v688_v28 }
 0x444   : > { %v693_v32 = vsel %vm692_vm8, %v1439_v24, %v689_v30 }
 0x445   : > { %v698_v33 = vsel %vm695_vm9, %v697_v31, %v693_v32  ;;  %v1354_v32 = vld [vmem:[%s1991_s3 + $0x70] sm:$0xff] }
 0x446   : > { %v699_v34 = vmul.f32 %v1437_v9, %v698_v33  ;;  %v1353_v33 = vld [vmem:[%s1991_s3 + $0x68] sm:$0xff] }
 0x448   : > { %1313 = vmatmul.msk.f32.vlgmr.msra.gmra.mxu1 %vm456_vm1, %v699_v34  ;;  %1312 = vst.msk [vmem:[%s1748_s25 + $0x8] sm:$0xff] %vm456_vm1, %v699_v34  ;;  %v1352_v34 = vld [vmem:[%s1991_s3 + $0x60] sm:$0xff] }
 0x449   : > { %969 = vmatpush.msra.mxu1 %v1343_v0 }
 0x44b   : > { %970 = vmatpush.msra.mxu1 %v1342_v1 }
 0x44d   : > { %971 = vmatpush.msra.mxu1 %v1341_v3 }
 0x44f   : > { %972 = vmatpush.msra.mxu1 %v1340_v4 }
 0x450   : > { %1333 = vmatmul.msk.f32.vlgmr.msrb.gmra.mxu1 %vm367_vm0, %v1679_v8 }
 0x458   : > { %1345 = vmatmul.msk.f32.vlgmr.msra.gmra.mxu1 %vm367_vm0, %v1679_v8 }
 0x4c5   : > { %v722_v38 = vpop.f32.mrf.mxu1 }
 0x4c6   : > { %1315 = vmatmul.msk.f32.vlgmr.msra.gmra.mxu2 %vm456_vm1, %v722_v38 }
 0x4c7   : > { %999 = vmatpush.msra.mxu2 %v1349_v58 }
 0x4c9   : > { %1000 = vmatpush.msra.mxu2 %v1348_v61 }
 0x4cb   : > { %1001 = vmatpush.msra.mxu2 %v1347_v62 }
 0x4cd   : > { %v840_v59 = vpop.f32.mrf.mxu1  ;;  %1002 = vmatpush.msra.mxu2 %v1346_v63 }
 0x4ce   : > { %1335 = vmatmul.msk.f32.vlgmr.msrb.gmra.mxu2 %vm456_vm1, %v781_v41  ;;  %v841_v60 = vadd.f32 %v1427_v57, %v840_v59 }
 0x4d0   : > { %914 = vmatpush.msra.mxu3 %v841_v60 }
 0x4d2   : > { %1029 = vmatpush.msrb.mxu3 %v1355_v25 }
 0x4d4   : > { %1030 = vmatpush.msrb.mxu3 %v1354_v32 }
 0x4d5   : > { %v974_v23 = vpop.f32.mrf.mxu1 }
 0x4d6   : > { %1351 = vmatmul.msk.f32.vlgmr.msra.gmra.mxu2 %vm367_vm0, %v1679_v8  ;;  %v975_v24 = vadd.f32 %v1429_v22, %v974_v23  ;;  %1031 = vmatpush.msrb.mxu3 %v1353_v33 }
 0x4d8   : > { %1032 = vmatpush.msrb.mxu3 %v1352_v34 }
 0x549   : > { %v748_v43 = vpop.f32.mrf.mxu2 }
 0x54a   : > { %v751_v44 = vadd.f32 %v748_v43, %v725_v42  ;;  %v1362_v43 = vld [vmem:[%s1976_s7 + $0x18] sm:$0xff] }
 0x54b   : > { %1134 = vmatpush.msrb.mxu2 %v1362_v43 }
 0x54c   : > { %752 = vst.msk [vmem:[#allocation2] sm:$0xff] %vm367_vm0, %v751_v44 }
 0x551   : > { %v866_v45 = vpop.f32.mrf.mxu2 }
 0x552   : > { %v869_v46 = vmul.f32 0.35355338, %v866_v45 }
 0x553   : > { %v919_v26 = vld [vmem:[#allocation2] sm:$0xff] }
 0x554   : > { %v870_v47 = vsel %vm456_vm1, %v869_v46, -inf }
 0x555   : > { %871 = vmax.xlane.f32.xlu2 %v870_v47 }
 0x559   : > { %v1004_v19 = vpop.f32.mrf.mxu2 }
 0x55a   : > { %v1005_v20 = vadd.f32 %v1428_v18, %v1004_v19 }
 0x55c   : > { %1358 = vmatpush.xpose.msk.msrb.mxu0 %vm456_vm1, %v1005_v20 }
 0x5c8   : > { %v872_v52 = vpop.xlane.xlu2 %871 }
 0x5c9   : > { %v873_v53 = vsub.f32 %v869_v46, %v872_v52 }
 0x5cb   : > { %v874_v54 = vmul.f32 1.442695, %v873_v53 }
 0x5cd   : > { %1440 = vpow2.f32 %v874_v54 }
 0x5d3   : > { %v1441_v55 = vpop.eup %1440 }
 0x5d4   : > { %v876_v56 = vsel %vm456_vm1, %v1441_v55, 0.0 }
 0x5d5   : > { %877 = vadd.xlane.f32.xlu2 %v876_v56 }
 0x648   : > { %v878_v5 = vpop.xlane.xlu2 %877 }
 0x649   : > { %1442 = vrcp.f32 %v878_v5  ;;  %v890_v10 = vand.u32 2147483648, %v878_v5  ;;  %v888_v12 = vand.u32 2147483647, %v878_v5  ;;  %vm884_vm11 = vweird.f32 %v878_v5 }
 0x64b   : > { %v891_v14 = vor.u32 1.1754944e-38, %v890_v10  ;;  %vm889_vm13 = vcmp.eq.f32.partialorder %v888_v12, 8.507059e+37 }
 0x64f   : > { %v1443_v6 = vpop.eup %1442 }
 0x650   : > { %v880_v7 = vmul.f32 %v1443_v6, %v878_v5  ;;  %vm885_vm10 = vweird.f32 %v1443_v6 }
 0x651   : > { %vm886_vm12 = vmor %vm884_vm11, %vm885_vm10 }
 0x652   : > { %v881_v9 = vsub.f32 1.0, %v880_v7 }
 0x654   : > { %v882_v11 = vmul.f32 %v1443_v6, %v881_v9 }
 0x656   : > { %v883_v13 = vadd.f32 %v1443_v6, %v882_v11 }
 0x658   : > { %v887_v15 = vsel %vm886_vm12, %v1443_v6, %v883_v13 }
 0x659   : > { %v892_v16 = vsel %vm889_vm13, %v891_v14, %v887_v15 }
 0x65a   : > { %v893_v17 = vmul.f32 %v1441_v55, %v892_v16 }
 0x65c   : > { %1337 = vmatmul.msk.f32.vlgmr.msra.gmra.mxu3 %vm456_vm1, %v893_v17  ;;  %1336 = vst.msk [vmem:[%s1748_s25 + $0x10] sm:$0xff] %vm456_vm1, %v893_v17 }
 0x664   : > { %1357 = vmatmul.msk.f32.vlgmr.msrb.gmra.mxu3 %vm367_vm0, %v1679_v8 }
 0x6df   : > { %v916_v21 = vpop.f32.mrf.mxu3 }
 0x6e0   : > { %1339 = vmatmul.msk.f32.vlgmr.msra.gmra.mxu0 %vm456_vm1, %v916_v21 }
 0x6e7   : > { %v1034_v41 = vpop.f32.mrf.mxu3 }
 0x6e8   : > { %1359 = vmatmul.msk.f32.vlgmr.msrb.gmra.mxu0 %vm456_vm1, %v975_v24  ;;  %v1035_v42 = vadd.f32 %v1430_v40, %v1034_v41 }
 0x6ea   : > { %1108 = vmatpush.msrb.mxu1 %v1035_v42 }
 0x75d   : > { %v942_v27 = vpop.f32.mrf.mxu0 }
 0x75e   : > { %v945_v28 = vadd.f32 %v942_v27, %v919_v26 }
 0x760   : > { %946 = vst.msk [vmem:[#allocation2] sm:$0xff] %vm367_vm0, %v945_v28 }
 0x765   : > { %v1060_v29 = vpop.f32.mrf.mxu0 }
 0x766   : > { %v1063_v30 = vmul.f32 0.35355338, %v1060_v29 }
 0x768   : > { %v1064_v31 = vsel %vm456_vm1, %v1063_v30, -inf }
 0x769   : > { %1065 = vmax.xlane.f32.xlu0 %v1064_v31 }
 0x7dc   : > { %v1066_v35 = vpop.xlane.xlu0 %1065 }
 0x7dd   : > { %v1067_v36 = vsub.f32 %v1063_v30, %v1066_v35 }
 0x7df   : > { %v1068_v37 = vmul.f32 1.442695, %v1067_v36 }
 0x7e1   : > { %1444 = vpow2.f32 %v1068_v37 }
 0x7e7   : > { %v1445_v38 = vpop.eup %1444 }
 0x7e8   : > { %v1070_v39 = vsel %vm456_vm1, %v1445_v38, 0.0 }
 0x7e9   : > { %1071 = vadd.xlane.f32.xlu1 %v1070_v39 }
 0x85c   : > { %v1072_v8 = vpop.xlane.xlu1 %1071 }
 0x85d   : > { %1446 = vrcp.f32 %v1072_v8  ;;  %v1084_v47 = vand.u32 2147483648, %v1072_v8  ;;  %v1082_v49 = vand.u32 2147483647, %v1072_v8  ;;  %vm1078_vm15 = vweird.f32 %v1072_v8 }
 0x85f   : > { %v1085_v51 = vor.u32 1.1754944e-38, %v1084_v47  ;;  %vm1083_vm3 = vcmp.eq.f32.partialorder %v1082_v49, 8.507059e+37 }
 0x863   : > { %v1447_v44 = vpop.eup %1446 }
 0x864   : > { %v1074_v45 = vmul.f32 %v1447_v44, %v1072_v8  ;;  %vm1079_vm14 = vweird.f32 %v1447_v44 }
 0x865   : > { %vm1080_vm2 = vmor %vm1078_vm15, %vm1079_vm14 }
 0x866   : > { %v1075_v46 = vsub.f32 1.0, %v1074_v45 }
 0x868   : > { %v1076_v48 = vmul.f32 %v1447_v44, %v1075_v46 }
 0x86a   : > { %v1077_v50 = vadd.f32 %v1447_v44, %v1076_v48 }
 0x86c   : > { %v1081_v52 = vsel %vm1080_vm2, %v1447_v44, %v1077_v50 }
 0x86d   : > { %v1086_v53 = vsel %vm1083_vm3, %v1085_v51, %v1081_v52 }
 0x86e   : > { %v1087_v54 = vmul.f32 %v1445_v38, %v1086_v53 }
 0x870   : > { %1361 = vmatmul.msk.f32.vlgmr.msrb.gmra.mxu1 %vm456_vm1, %v1087_v54  ;;  %1360 = vst.msk [vmem:[%s1748_s25 + $0x18] sm:$0xff] %vm456_vm1, %v1087_v54 }
 0x8ed   : > { %v1110_v55 = vpop.f32.mrf.mxu1 }
 0x8ee   : > { %1363 = vmatmul.msk.f32.vlgmr.msrb.gmra.mxu2 %vm456_vm1, %v1110_v55 }
 0x8ef   : > { %1475 = shalt.err (!%p1472_p3)
}
 0x8f0   : > { %s1545_s25 = smov 128   ;;  %s1546_s0 = smov 8   ;;  %v1113_v56 = vld [vmem:[#allocation2] sm:$0xff] }
 0x8f1   : > { %1373 = dma.vmem_to_hbm [thread:$0]  (%p1640_p5), %s1181_s11, 512, %s1183_s12, %s1154_s18, %s1545_s25, %s1545_s25, %s1546_s0  }
 0x8f2   : > { %s1282_s1 = sshll.u32 %s1744_s20, 3  ;;  %s1366_s28 = sshll.u32 %s1623_s17, 3  ;;  %v1431_v59 = vld [vmem:[%s1977_s8] ss:$0 sm:$0xff] }
 0x8f3   : > { %s1164_s4 = scalar_lea.hbm %s1978_s9, %s1366_s28  ;;  %s354_s21 = scalar_lea.vmem [#allocation3], %s1282_s1 }
 0x8f4   : > { %s1166_s26 = sshll.u32 %s354_s21, 4  ;;  %s1168_s11 = sshll.u32 %s1164_s4, 4  ;;  %s1167_s26 = int_to_ptr.vmem [resolvable:$true] %s1166_s26  ;;  %s1169_s11 = int_to_ptr.hbm [resolvable:$true] %s1168_s11 }
 0x8f5   : > { %s1149_s17 = scalar_lea.sflag [#allocation4], %s1744_s20  ;;  %s1490_s12 = sshra.s32 %s1169_s11, 4  ;;  %s1491_s12 = int_to_ptr.hbm [resolvable:$true] %s1490_s12 }
 0x8f6   : > { %s1492_s18 = scalar_lea.hbm %s1491_s12, 8  ;;  %s1496_s0 = scalar_lea.hbm %s1978_s9, 16 }
 0x8f7   : > { %p1493_p4 = scmp.ne.s32.totalorder %s1491_s12, %s1492_s18  ;;  %p1497_p9 = scmp.lt.s32.totalorder %s1491_s12, %s1978_s9 }
 0x8f8   : > { %p1498_p10 = scmp.lt.s32.totalorder %s1496_s0, %s1492_s18 }
 0x8f9   : > { %p1494_p7 = pnand %p1493_p4, %p1640_p5 }
 0x8fa   : > { %p1499_p11 = por %p1498_p10, %p1497_p9 }
 0x8fb   : > { %p1495_p8 = pneg %p1494_p7 }
 0x8fd   : > { %p1500_p12 = pnand %p1499_p11, %p1495_p8 }
 0x971   : > { %v1136_v57 = vpop.f32.mrf.mxu2 }
 0x972   : > { %v1139_v58 = vadd.f32 %v1136_v57, %v1113_v56 }
 0x974   : > { %1140 = vst.msk [vmem:[#allocation2] sm:$0xff] %vm367_vm0, %v1139_v58 }
 0x97b   : > { %v1141_v60 = vld [vmem:[#allocation2] sm:$0xff] }
 0x97c   : > { %v1146_v61 = vadd.f32 %v1431_v59, %v1141_v60 }
 0x97e   : > { %1147 = vst.msk [vmem:[%s354_s21] sm:$0xff] %vm367_vm0, %v1146_v61 }
 0x97f   : > { %1503 = shalt.err (!%p1500_p12)
}
 0x980   : > { %1372 = dma.vmem_to_hbm [thread:$0]  (%p1640_p5), %s1167_s26, 128, %s1169_s11, %s1149_s17  }
 0x981 PF: > { %p1383_p13 = scmp.ge.s32.totalorder %s1542_s16, 2  ;;  %s1197_s20 = sand.u32 1, %s1530_s13  }
 0x982   : > { %s1198_s3 = scalar_lea.sflag [#allocation4], %s1197_s20 }
 0x983   : > { %p1377_p0 = pnand %p1383_p13, %p1644_p6 }
 0x985   : > { %p1378_p1 = pneg %p1377_p0 }
 0x987   : > { %1521 = dma.done.wait (%p1378_p1), %s1198_s3, 128  }
 0x988   : > { %1523 = vsyncadd (%p1378_p1), %s1198_s3, 4294967168  ;;  %s1208_s2 = scalar_lea.sflag [#allocation6], %s1197_s20 }
 0x989   : > { %1525 = dma.done.wait (%p1378_p1), %s1208_s2, 512  }
 0x98a   : > { %1527 = vsyncadd (%p1378_p1), %s1208_s2, 4294966784  ;;  %p24_p5 = scmp.ge.s32.totalorder %s1627_s19, 4   ;;  %s1992_s13 = smov %s1534_s14 }
 0x98b   : > { %s1993_s14 = smov %s1538_s15  ;;  %s1994_s15 = smov %s1638_s22 }
 0x98c   : > { %s1995_s16 = smov %s1627_s19  ;;  %26 = sbr.rel (!%p24_p5) target bundleno = 11 (0xb), region = 132 }
 0x991   :  { %1214 = vsyncpa [#allocation4], 1 }
 0x992   :  { %1216 = vsyncpa [#allocation4 + $0x1], 1 }
 0x993   :  { %1217 = vsyncpa [#allocation6], 1 }
 0x994   :  { %1219 = vsyncpa [#allocation6 + $0x1], 1 }

</bundles_post_ra>
